<compile_context>
chip_gen: v5e
topology: v5e:2x2
jax: 0.10.0
libtpu: 0.0.40
codegen_flags: <defaults>
</compile_context>

<pallas_src>
import jax
import jax.numpy as jnp
from jax.experimental import pallas as pl

# ----------------------- module hyper-parameters (small) --------------------
B = 2
T = 16
INPUT_DIM = 32
INPUT_AFFINE_DIM = 32
FSMN_LAYERS = 2
LINEAR_DIM = 32
PROJ_DIM = 16
LORDER = 3
RORDER = 2
LSTRIDE = 1
RSTRIDE = 1
OUTPUT_AFFINE_DIM = 32
OUTPUT_DIM = 8
USE_SOFTMAX = True

LANE = 128            # TPU lane width; packed slabs are 128 lanes wide
BT = B * T
NEG = -1e30           # "minus infinity" bias for padded output lanes (softmax -> 0)

# Temporal taps of the memory block; shift s means y[t] = p[t - s].
SHIFTS = [(LORDER - 1 - k) * LSTRIDE for k in range(LORDER)] + \
         [-(k + 1) * RSTRIDE for k in range(RORDER)]
NTAPS = len(SHIFTS)


# ------------------------ packed-weight slab layout ---------------------------
def _make_layout():
    layout = {}
    row = 0

    def add(name, nrows, ncols):
        nonlocal row
        layout[name] = (row, nrows, ncols)
        row += nrows

    add("in_w1", INPUT_DIM, INPUT_AFFINE_DIM)
    add("in_w2", INPUT_AFFINE_DIM, LINEAR_DIM)
    add("out_w1", LINEAR_DIM, OUTPUT_AFFINE_DIM)
    add("out_w2", OUTPUT_AFFINE_DIM, LANE)           # stored lane-padded to 128
    for l in range(FSMN_LAYERS):
        add(f"lin_w{l}", LINEAR_DIM, PROJ_DIM)
    for l in range(FSMN_LAYERS):
        for j in range(NTAPS):
            add(f"tap_w{l}_{j}", PROJ_DIM, LINEAR_DIM)   # folded diag(conv)@aff_w
    for j, s in enumerate(SHIFTS):
        if s != 0:
            add(f"shift{j}", BT, BT)                 # block-diag temporal shift matrix
    return layout, row


LAYOUT, W_ROWS = _make_layout()

# bias-slab row indices
ROW_IN_B1 = 0
ROW_IN_B2 = 1
ROW_AFF_B = 2                      # layer l -> ROW_AFF_B + l
ROW_OUT_B1 = 2 + FSMN_LAYERS
ROW_OUT_B2 = 3 + FSMN_LAYERS
B_ROWS = ((4 + FSMN_LAYERS + 7) // 8) * 8


# ----------------------------- host-side packing -----------------------------
def pack_params(params):
    """Fold conv taps into the affine weights and pack everything into two
    lane-aligned slabs: (W_ROWS, 128) matrices and (B_ROWS, 128) bias rows."""
    wslab = jnp.zeros((W_ROWS, LANE), jnp.float32)

    def put(slab, name, mat):
        r, nr, nc = LAYOUT[name]
        assert mat.shape == (nr, nc), (name, mat.shape, (nr, nc))
        return slab.at[r:r + nr, :nc].set(mat.astype(jnp.float32))

    wslab = put(wslab, "in_w1", params["in_w1"])
    wslab = put(wslab, "in_w2", params["in_w2"])
    wslab = put(wslab, "out_w1", params["out_w1"])

    out_w2 = jnp.zeros((OUTPUT_AFFINE_DIM, LANE), jnp.float32)
    out_w2 = out_w2.at[:, :OUTPUT_DIM].set(params["out_w2"])
    wslab = put(wslab, "out_w2", out_w2)

    for l in range(FSMN_LAYERS):
        wslab = put(wslab, f"lin_w{l}", params["lin_w"][l])
        for j, s in enumerate(SHIFTS):
            if j < LORDER:
                coeff = params["conv_left"][l, j]
            else:
                coeff = params["conv_right"][l, j - LORDER]
            tap_w = coeff[:, None] * params["aff_w"][l]      # diag(conv)@aff_w
            if s == 0:
                tap_w = tap_w + params["aff_w"][l]           # identity path of memory block
            wslab = put(wslab, f"tap_w{l}_{j}", tap_w)

    # Block-diagonal 0/1 temporal shift matrices (y = S @ p -> y[t] = p[t - s]
    # within each batch element, zeros past the batch boundary).
    eye_b = jnp.eye(B, dtype=jnp.float32)
    for j, s in enumerate(SHIFTS):
        if s != 0:
            local = jnp.eye(T, k=-s, dtype=jnp.float32)
            wslab = put(wslab, f"shift{j}", jnp.kron(eye_b, local))

    bslab = jnp.zeros((B_ROWS, LANE), jnp.float32)
    bslab = bslab.at[ROW_IN_B1, :INPUT_AFFINE_DIM].set(params["in_b1"][0])
    bslab = bslab.at[ROW_IN_B2, :LINEAR_DIM].set(params["in_b2"][0])
    for l in range(FSMN_LAYERS):
        bslab = bslab.at[ROW_AFF_B + l, :LINEAR_DIM].set(params["aff_b"][l, 0])
    bslab = bslab.at[ROW_OUT_B1, :OUTPUT_AFFINE_DIM].set(params["out_b1"][0])
    bslab = bslab.at[ROW_OUT_B2, :].set(NEG)                 # padded lanes -> "-inf"
    bslab = bslab.at[ROW_OUT_B2, :OUTPUT_DIM].set(params["out_b2"][0])
    return wslab, bslab


# -------------------------------- Pallas kernel -------------------------------
def fsmn_kernel(x_ref, w_ref, b_ref, o_ref):
    f32 = jnp.float32

    def wmat(name):
        r, nr, nc = LAYOUT[name]
        return w_ref[r:r + nr, 0:nc]

    def brow(row, ncols):
        return b_ref[row:row + 1, 0:ncols]

    x = x_ref[...]                                               # (B*T, INPUT_DIM)

    # in_linear1 -> in_linear2 -> relu
    h = jnp.dot(x, wmat("in_w1"), preferred_element_type=f32) + brow(ROW_IN_B1, INPUT_AFFINE_DIM)
    h = jnp.dot(h, wmat("in_w2"), preferred_element_type=f32) + brow(ROW_IN_B2, LINEAR_DIM)
    h = jnp.maximum(h, 0.0)

    # FSMN stack: linear -> (memory block + affine, folded to per-tap MXU matmuls) -> relu
    for l in range(FSMN_LAYERS):
        p = jnp.dot(h, wmat(f"lin_w{l}"), preferred_element_type=f32)   # (B*T, PROJ_DIM)
        acc = None
        for j, s in enumerate(SHIFTS):
            if s == 0:
                pj = p
            else:
                pj = jnp.dot(wmat(f"shift{j}"), p, preferred_element_type=f32)
            term = jnp.dot(pj, wmat(f"tap_w{l}_{j}"), preferred_element_type=f32)
            acc = term if acc is None else acc + term
        h = jnp.maximum(acc + brow(ROW_AFF_B + l, LINEAR_DIM), 0.0)

    # out_linear1 -> out_linear2 (lane-padded to 128) -> softmax
    y = jnp.dot(h, wmat("out_w1"), preferred_element_type=f32) + brow(ROW_OUT_B1, OUTPUT_AFFINE_DIM)
    y = jnp.dot(y, wmat("out_w2"), preferred_element_type=f32) + brow(ROW_OUT_B2, LANE)

    if USE_SOFTMAX:
        y = y - jnp.max(y, axis=-1, keepdims=True)
        e = jnp.exp(y)                                   # padded lanes: exp(-1e30) == 0
        y = e * pl.reciprocal(jnp.sum(e, axis=-1, keepdims=True), approx=True)

    o_ref[...] = y.astype(o_ref.dtype)                   # unmasked (B*T, 128) store


# --------------------------------- wrapper ------------------------------------
def fsmn_forward(x, params):
    wslab, bslab = pack_params(params)
    xf = x.reshape(B * T, INPUT_DIM).astype(jnp.float32)

    out = pl.pallas_call(
        fsmn_kernel,
        out_shape=jax.ShapeDtypeStruct((BT, LANE), jnp.float32),
    )(xf, wslab, bslab)

    # TODO(synk): streaming cache path (per-layer left-context carry dict) is
    # host-side state management and is not implemented in-kernel.
    return out[:, :OUTPUT_DIM].reshape(B, T, OUTPUT_DIM)


# ----------------------------- pure-JAX reference ------------------------------
def fsmn_reference(x, params):
    h = x @ params["in_w1"] + params["in_b1"][0]
    h = h @ params["in_w2"] + params["in_b2"][0]
    h = jnp.maximum(h, 0.0)
    for l in range(FSMN_LAYERS):
        p = h @ params["lin_w"][l]
        mem = p
        for k in range(LORDER):
            s = (LORDER - 1 - k) * LSTRIDE
            shifted = jnp.pad(p, ((0, 0), (s, 0), (0, 0)))[:, :T, :] if s else p
            mem = mem + shifted * params["conv_left"][l, k]
        for k in range(RORDER):
            s = (k + 1) * RSTRIDE
            shifted = jnp.pad(p, ((0, 0), (0, s), (0, 0)))[:, s:, :] if s else p
            mem = mem + shifted * params["conv_right"][l, k]
        a = mem @ params["aff_w"][l] + params["aff_b"][l, 0]
        h = jnp.maximum(a, 0.0)
    y = h @ params["out_w1"] + params["out_b1"][0]
    y = y @ params["out_w2"] + params["out_b2"][0]
    if USE_SOFTMAX:
        y = jax.nn.softmax(y, axis=-1)
    return y


# --------------------------------- main ---------------------------------------
def make_params(key):
    ks = jax.random.split(key, 13)
    s = 0.1
    return {
        "in_w1": jax.random.normal(ks[0], (INPUT_DIM, INPUT_AFFINE_DIM), jnp.float32) * s,
        "in_b1": jax.random.normal(ks[1], (1, INPUT_AFFINE_DIM), jnp.float32) * s,
        "in_w2": jax.random.normal(ks[2], (INPUT_AFFINE_DIM, LINEAR_DIM), jnp.float32) * s,
        "in_b2": jax.random.normal(ks[3], (1, LINEAR_DIM), jnp.float32) * s,
        "lin_w": jax.random.normal(ks[4], (FSMN_LAYERS, LINEAR_DIM, PROJ_DIM), jnp.float32) * s,
        "conv_left": jax.random.normal(ks[5], (FSMN_LAYERS, LORDER, PROJ_DIM), jnp.float32) * s,
        "conv_right": jax.random.normal(ks[6], (FSMN_LAYERS, RORDER, PROJ_DIM), jnp.float32) * s,
        "aff_w": jax.random.normal(ks[7], (FSMN_LAYERS, PROJ_DIM, LINEAR_DIM), jnp.float32) * s,
        "aff_b": jax.random.normal(ks[8], (FSMN_LAYERS, 1, LINEAR_DIM), jnp.float32) * s,
        "out_w1": jax.random.normal(ks[9], (LINEAR_DIM, OUTPUT_AFFINE_DIM), jnp.float32) * s,
        "out_b1": jax.random.normal(ks[10], (1, OUTPUT_AFFINE_DIM), jnp.float32) * s,
        "out_w2": jax.random.normal(ks[11], (OUTPUT_AFFINE_DIM, OUTPUT_DIM), jnp.float32) * s,
        "out_b2": jax.random.normal(ks[12], (1, OUTPUT_DIM), jnp.float32) * s,
    }


if __name__ == "__main__":
    key = jax.random.PRNGKey(0)
    kx, kp = jax.random.split(key)
    x = jax.random.normal(kx, (B, T, INPUT_DIM), jnp.float32)
    params = make_params(kp)

    out = fsmn_forward(x, params)
    out = jax.block_until_ready(out)

    ref = fsmn_reference(x, params)
    assert out.shape == (B, T, OUTPUT_DIM)
    # Tolerance covers the approx EUP reciprocal in the softmax and the
    # re-association from folding the memory block into MXU matmuls.
    assert jnp.allclose(out, ref, atol=2e-3, rtol=2e-3), "mismatch vs reference"
    print("KERNEL_OK")
</pallas_src>

<mosaic_0001>
module attributes {stable_mosaic.version = 11 : i64} {
  func.func @fsmn_kernel(%arg0: memref<32x32xf32, #tpu.memory_space<vmem>>, %arg1: memref<480x128xf32, #tpu.memory_space<vmem>>, %arg2: memref<8x128xf32, #tpu.memory_space<vmem>>, %arg3: memref<32x128xf32, #tpu.memory_space<vmem>>) attributes {dimension_semantics = [], scalar_prefetch = 0 : i64, scratch_operands = 0 : i64, tpu.core_type = #tpu.core_type<tc>} {
    %c0 = arith.constant 0 : index
    %c0_0 = arith.constant 0 : index
    %0 = vector.load %arg0[%c0, %c0_0] : memref<32x32xf32, #tpu.memory_space<vmem>>, vector<32x32xf32>
    %c0_1 = arith.constant 0 : index
    %c0_2 = arith.constant 0 : index
    %1 = vector.load %arg1[%c0_1, %c0_2] : memref<480x128xf32, #tpu.memory_space<vmem>>, vector<32x32xf32>
    %cst = arith.constant dense<0.000000e+00> : vector<32x32xf32>
    %2 = tpu.matmul %0, %1, %cst {dimension_numbers = #tpu.dot_dimension_numbers<[1], [0], [0], [1], [0, 0, 1, 1], [], []>} : vector<32x32xf32>, vector<32x32xf32>, vector<32x32xf32> -> vector<32x32xf32>
    %c0_3 = arith.constant 0 : index
    %c0_4 = arith.constant 0 : index
    %3 = vector.load %arg2[%c0_3, %c0_4] : memref<8x128xf32, #tpu.memory_space<vmem>>, vector<1x32xf32>
    %4 = vector.broadcast %3 : vector<1x32xf32> to vector<32x32xf32>
    %5 = arith.addf %2, %4 : vector<32x32xf32>
    %c32 = arith.constant 32 : index
    %c0_5 = arith.constant 0 : index
    %6 = vector.load %arg1[%c32, %c0_5] : memref<480x128xf32, #tpu.memory_space<vmem>>, vector<32x32xf32>
    %cst_6 = arith.constant dense<0.000000e+00> : vector<32x32xf32>
    %7 = tpu.matmul %5, %6, %cst_6 {dimension_numbers = #tpu.dot_dimension_numbers<[1], [0], [0], [1], [0, 0, 1, 1], [], []>} : vector<32x32xf32>, vector<32x32xf32>, vector<32x32xf32> -> vector<32x32xf32>
    %c1 = arith.constant 1 : index
    %c0_7 = arith.constant 0 : index
    %8 = vector.load %arg2[%c1, %c0_7] : memref<8x128xf32, #tpu.memory_space<vmem>>, vector<1x32xf32>
    %9 = vector.broadcast %8 : vector<1x32xf32> to vector<32x32xf32>
    %10 = arith.addf %7, %9 : vector<32x32xf32>
    %cst_8 = arith.constant 0.000000e+00 : f32
    %11 = vector.broadcast %cst_8 : f32 to vector<32x32xf32>
    %12 = arith.maximumf %10, %11 : vector<32x32xf32>
    %c128 = arith.constant 128 : index
    %c0_9 = arith.constant 0 : index
    %13 = vector.load %arg1[%c128, %c0_9] : memref<480x128xf32, #tpu.memory_space<vmem>>, vector<32x16xf32>
    %cst_10 = arith.constant dense<0.000000e+00> : vector<32x16xf32>
    %14 = tpu.matmul %12, %13, %cst_10 {dimension_numbers = #tpu.dot_dimension_numbers<[1], [0], [0], [1], [0, 0, 1, 1], [], []>} : vector<32x32xf32>, vector<32x16xf32>, vector<32x16xf32> -> vector<32x16xf32>
    %c352 = arith.constant 352 : index
    %c0_11 = arith.constant 0 : index
    %15 = vector.load %arg1[%c352, %c0_11] : memref<480x128xf32, #tpu.memory_space<vmem>>, vector<32x32xf32>
    %cst_12 = arith.constant dense<0.000000e+00> : vector<32x16xf32>
    %16 = tpu.matmul %15, %14, %cst_12 {dimension_numbers = #tpu.dot_dimension_numbers<[1], [0], [0], [1], [0, 0, 1, 1], [], []>} : vector<32x32xf32>, vector<32x16xf32>, vector<32x16xf32> -> vector<32x16xf32>
    %c192 = arith.constant 192 : index
    %c0_13 = arith.constant 0 : index
    %17 = vector.load %arg1[%c192, %c0_13] : memref<480x128xf32, #tpu.memory_space<vmem>>, vector<16x32xf32>
    %cst_14 = arith.constant dense<0.000000e+00> : vector<32x32xf32>
    %18 = tpu.matmul %16, %17, %cst_14 {dimension_numbers = #tpu.dot_dimension_numbers<[1], [0], [0], [1], [0, 0, 1, 1], [], []>} : vector<32x16xf32>, vector<16x32xf32>, vector<32x32xf32> -> vector<32x32xf32>
    %c384 = arith.constant 384 : index
    %c0_15 = arith.constant 0 : index
    %19 = vector.load %arg1[%c384, %c0_15] : memref<480x128xf32, #tpu.memory_space<vmem>>, vector<32x32xf32>
    %cst_16 = arith.constant dense<0.000000e+00> : vector<32x16xf32>
    %20 = tpu.matmul %19, %14, %cst_16 {dimension_numbers = #tpu.dot_dimension_numbers<[1], [0], [0], [1], [0, 0, 1, 1], [], []>} : vector<32x32xf32>, vector<32x16xf32>, vector<32x16xf32> -> vector<32x16xf32>
    %c208 = arith.constant 208 : index
    %c0_17 = arith.constant 0 : index
    %21 = vector.load %arg1[%c208, %c0_17] : memref<480x128xf32, #tpu.memory_space<vmem>>, vector<16x32xf32>
    %cst_18 = arith.constant dense<0.000000e+00> : vector<32x32xf32>
    %22 = tpu.matmul %20, %21, %cst_18 {dimension_numbers = #tpu.dot_dimension_numbers<[1], [0], [0], [1], [0, 0, 1, 1], [], []>} : vector<32x16xf32>, vector<16x32xf32>, vector<32x32xf32> -> vector<32x32xf32>
    %23 = arith.addf %18, %22 : vector<32x32xf32>
    %c224 = arith.constant 224 : index
    %c0_19 = arith.constant 0 : index
    %24 = vector.load %arg1[%c224, %c0_19] : memref<480x128xf32, #tpu.memory_space<vmem>>, vector<16x32xf32>
    %cst_20 = arith.constant dense<0.000000e+00> : vector<32x32xf32>
    %25 = tpu.matmul %14, %24, %cst_20 {dimension_numbers = #tpu.dot_dimension_numbers<[1], [0], [0], [1], [0, 0, 1, 1], [], []>} : vector<32x16xf32>, vector<16x32xf32>, vector<32x32xf32> -> vector<32x32xf32>
    %26 = arith.addf %23, %25 : vector<32x32xf32>
    %c416 = arith.constant 416 : index
    %c0_21 = arith.constant 0 : index
    %27 = vector.load %arg1[%c416, %c0_21] : memref<480x128xf32, #tpu.memory_space<vmem>>, vector<32x32xf32>
    %cst_22 = arith.constant dense<0.000000e+00> : vector<32x16xf32>
    %28 = tpu.matmul %27, %14, %cst_22 {dimension_numbers = #tpu.dot_dimension_numbers<[1], [0], [0], [1], [0, 0, 1, 1], [], []>} : vector<32x32xf32>, vector<32x16xf32>, vector<32x16xf32> -> vector<32x16xf32>
    %c240 = arith.constant 240 : index
    %c0_23 = arith.constant 0 : index
    %29 = vector.load %arg1[%c240, %c0_23] : memref<480x128xf32, #tpu.memory_space<vmem>>, vector<16x32xf32>
    %cst_24 = arith.constant dense<0.000000e+00> : vector<32x32xf32>
    %30 = tpu.matmul %28, %29, %cst_24 {dimension_numbers = #tpu.dot_dimension_numbers<[1], [0], [0], [1], [0, 0, 1, 1], [], []>} : vector<32x16xf32>, vector<16x32xf32>, vector<32x32xf32> -> vector<32x32xf32>
    %31 = arith.addf %26, %30 : vector<32x32xf32>
    %c448 = arith.constant 448 : index
    %c0_25 = arith.constant 0 : index
    %32 = vector.load %arg1[%c448, %c0_25] : memref<480x128xf32, #tpu.memory_space<vmem>>, vector<32x32xf32>
    %cst_26 = arith.constant dense<0.000000e+00> : vector<32x16xf32>
    %33 = tpu.matmul %32, %14, %cst_26 {dimension_numbers = #tpu.dot_dimension_numbers<[1], [0], [0], [1], [0, 0, 1, 1], [], []>} : vector<32x32xf32>, vector<32x16xf32>, vector<32x16xf32> -> vector<32x16xf32>
    %c256 = arith.constant 256 : index
    %c0_27 = arith.constant 0 : index
    %34 = vector.load %arg1[%c256, %c0_27] : memref<480x128xf32, #tpu.memory_space<vmem>>, vector<16x32xf32>
    %cst_28 = arith.constant dense<0.000000e+00> : vector<32x32xf32>
    %35 = tpu.matmul %33, %34, %cst_28 {dimension_numbers = #tpu.dot_dimension_numbers<[1], [0], [0], [1], [0, 0, 1, 1], [], []>} : vector<32x16xf32>, vector<16x32xf32>, vector<32x32xf32> -> vector<32x32xf32>
    %36 = arith.addf %31, %35 : vector<32x32xf32>
    %c2 = arith.constant 2 : index
    %c0_29 = arith.constant 0 : index
    %37 = vector.load %arg2[%c2, %c0_29] : memref<8x128xf32, #tpu.memory_space<vmem>>, vector<1x32xf32>
    %38 = vector.broadcast %37 : vector<1x32xf32> to vector<32x32xf32>
    %39 = arith.addf %36, %38 : vector<32x32xf32>
    %cst_30 = arith.constant 0.000000e+00 : f32
    %40 = vector.broadcast %cst_30 : f32 to vector<32x32xf32>
    %41 = arith.maximumf %39, %40 : vector<32x32xf32>
    %c160 = arith.constant 160 : index
    %c0_31 = arith.constant 0 : index
    %42 = vector.load %arg1[%c160, %c0_31] : memref<480x128xf32, #tpu.memory_space<vmem>>, vector<32x16xf32>
    %cst_32 = arith.constant dense<0.000000e+00> : vector<32x16xf32>
    %43 = tpu.matmul %41, %42, %cst_32 {dimension_numbers = #tpu.dot_dimension_numbers<[1], [0], [0], [1], [0, 0, 1, 1], [], []>} : vector<32x32xf32>, vector<32x16xf32>, vector<32x16xf32> -> vector<32x16xf32>
    %c352_33 = arith.constant 352 : index
    %c0_34 = arith.constant 0 : index
    %44 = vector.load %arg1[%c352_33, %c0_34] : memref<480x128xf32, #tpu.memory_space<vmem>>, vector<32x32xf32>
    %cst_35 = arith.constant dense<0.000000e+00> : vector<32x16xf32>
    %45 = tpu.matmul %44, %43, %cst_35 {dimension_numbers = #tpu.dot_dimension_numbers<[1], [0], [0], [1], [0, 0, 1, 1], [], []>} : vector<32x32xf32>, vector<32x16xf32>, vector<32x16xf32> -> vector<32x16xf32>
    %c272 = arith.constant 272 : index
    %c0_36 = arith.constant 0 : index
    %46 = vector.load %arg1[%c272, %c0_36] : memref<480x128xf32, #tpu.memory_space<vmem>>, vector<16x32xf32>
    %cst_37 = arith.constant dense<0.000000e+00> : vector<32x32xf32>
    %47 = tpu.matmul %45, %46, %cst_37 {dimension_numbers = #tpu.dot_dimension_numbers<[1], [0], [0], [1], [0, 0, 1, 1], [], []>} : vector<32x16xf32>, vector<16x32xf32>, vector<32x32xf32> -> vector<32x32xf32>
    %c384_38 = arith.constant 384 : index
    %c0_39 = arith.constant 0 : index
    %48 = vector.load %arg1[%c384_38, %c0_39] : memref<480x128xf32, #tpu.memory_space<vmem>>, vector<32x32xf32>
    %cst_40 = arith.constant dense<0.000000e+00> : vector<32x16xf32>
    %49 = tpu.matmul %48, %43, %cst_40 {dimension_numbers = #tpu.dot_dimension_numbers<[1], [0], [0], [1], [0, 0, 1, 1], [], []>} : vector<32x32xf32>, vector<32x16xf32>, vector<32x16xf32> -> vector<32x16xf32>
    %c288 = arith.constant 288 : index
    %c0_41 = arith.constant 0 : index
    %50 = vector.load %arg1[%c288, %c0_41] : memref<480x128xf32, #tpu.memory_space<vmem>>, vector<16x32xf32>
    %cst_42 = arith.constant dense<0.000000e+00> : vector<32x32xf32>
    %51 = tpu.matmul %49, %50, %cst_42 {dimension_numbers = #tpu.dot_dimension_numbers<[1], [0], [0], [1], [0, 0, 1, 1], [], []>} : vector<32x16xf32>, vector<16x32xf32>, vector<32x32xf32> -> vector<32x32xf32>
    %52 = arith.addf %47, %51 : vector<32x32xf32>
    %c304 = arith.constant 304 : index
    %c0_43 = arith.constant 0 : index
    %53 = vector.load %arg1[%c304, %c0_43] : memref<480x128xf32, #tpu.memory_space<vmem>>, vector<16x32xf32>
    %cst_44 = arith.constant dense<0.000000e+00> : vector<32x32xf32>
    %54 = tpu.matmul %43, %53, %cst_44 {dimension_numbers = #tpu.dot_dimension_numbers<[1], [0], [0], [1], [0, 0, 1, 1], [], []>} : vector<32x16xf32>, vector<16x32xf32>, vector<32x32xf32> -> vector<32x32xf32>
    %55 = arith.addf %52, %54 : vector<32x32xf32>
    %c416_45 = arith.constant 416 : index
    %c0_46 = arith.constant 0 : index
    %56 = vector.load %arg1[%c416_45, %c0_46] : memref<480x128xf32, #tpu.memory_space<vmem>>, vector<32x32xf32>
    %cst_47 = arith.constant dense<0.000000e+00> : vector<32x16xf32>
    %57 = tpu.matmul %56, %43, %cst_47 {dimension_numbers = #tpu.dot_dimension_numbers<[1], [0], [0], [1], [0, 0, 1, 1], [], []>} : vector<32x32xf32>, vector<32x16xf32>, vector<32x16xf32> -> vector<32x16xf32>
    %c320 = arith.constant 320 : index
    %c0_48 = arith.constant 0 : index
    %58 = vector.load %arg1[%c320, %c0_48] : memref<480x128xf32, #tpu.memory_space<vmem>>, vector<16x32xf32>
    %cst_49 = arith.constant dense<0.000000e+00> : vector<32x32xf32>
    %59 = tpu.matmul %57, %58, %cst_49 {dimension_numbers = #tpu.dot_dimension_numbers<[1], [0], [0], [1], [0, 0, 1, 1], [], []>} : vector<32x16xf32>, vector<16x32xf32>, vector<32x32xf32> -> vector<32x32xf32>
    %60 = arith.addf %55, %59 : vector<32x32xf32>
    %c448_50 = arith.constant 448 : index
    %c0_51 = arith.constant 0 : index
    %61 = vector.load %arg1[%c448_50, %c0_51] : memref<480x128xf32, #tpu.memory_space<vmem>>, vector<32x32xf32>
    %cst_52 = arith.constant dense<0.000000e+00> : vector<32x16xf32>
    %62 = tpu.matmul %61, %43, %cst_52 {dimension_numbers = #tpu.dot_dimension_numbers<[1], [0], [0], [1], [0, 0, 1, 1], [], []>} : vector<32x32xf32>, vector<32x16xf32>, vector<32x16xf32> -> vector<32x16xf32>
    %c336 = arith.constant 336 : index
    %c0_53 = arith.constant 0 : index
    %63 = vector.load %arg1[%c336, %c0_53] : memref<480x128xf32, #tpu.memory_space<vmem>>, vector<16x32xf32>
    %cst_54 = arith.constant dense<0.000000e+00> : vector<32x32xf32>
    %64 = tpu.matmul %62, %63, %cst_54 {dimension_numbers = #tpu.dot_dimension_numbers<[1], [0], [0], [1], [0, 0, 1, 1], [], []>} : vector<32x16xf32>, vector<16x32xf32>, vector<32x32xf32> -> vector<32x32xf32>
    %65 = arith.addf %60, %64 : vector<32x32xf32>
    %c3 = arith.constant 3 : index
    %c0_55 = arith.constant 0 : index
    %66 = vector.load %arg2[%c3, %c0_55] : memref<8x128xf32, #tpu.memory_space<vmem>>, vector<1x32xf32>
    %67 = vector.broadcast %66 : vector<1x32xf32> to vector<32x32xf32>
    %68 = arith.addf %65, %67 : vector<32x32xf32>
    %cst_56 = arith.constant 0.000000e+00 : f32
    %69 = vector.broadcast %cst_56 : f32 to vector<32x32xf32>
    %70 = arith.maximumf %68, %69 : vector<32x32xf32>
    %c64 = arith.constant 64 : index
    %c0_57 = arith.constant 0 : index
    %71 = vector.load %arg1[%c64, %c0_57] : memref<480x128xf32, #tpu.memory_space<vmem>>, vector<32x32xf32>
    %cst_58 = arith.constant dense<0.000000e+00> : vector<32x32xf32>
    %72 = tpu.matmul %70, %71, %cst_58 {dimension_numbers = #tpu.dot_dimension_numbers<[1], [0], [0], [1], [0, 0, 1, 1], [], []>} : vector<32x32xf32>, vector<32x32xf32>, vector<32x32xf32> -> vector<32x32xf32>
    %c4 = arith.constant 4 : index
    %c0_59 = arith.constant 0 : index
    %73 = vector.load %arg2[%c4, %c0_59] : memref<8x128xf32, #tpu.memory_space<vmem>>, vector<1x32xf32>
    %74 = vector.broadcast %73 : vector<1x32xf32> to vector<32x32xf32>
    %75 = arith.addf %72, %74 : vector<32x32xf32>
    %c96 = arith.constant 96 : index
    %c0_60 = arith.constant 0 : index
    %76 = vector.load %arg1[%c96, %c0_60] : memref<480x128xf32, #tpu.memory_space<vmem>>, vector<32x128xf32>
    %cst_61 = arith.constant dense<0.000000e+00> : vector<32x128xf32>
    %77 = tpu.matmul %75, %76, %cst_61 {dimension_numbers = #tpu.dot_dimension_numbers<[1], [0], [0], [1], [0, 0, 1, 1], [], []>} : vector<32x32xf32>, vector<32x128xf32>, vector<32x128xf32> -> vector<32x128xf32>
    %c5 = arith.constant 5 : index
    %c0_62 = arith.constant 0 : index
    %78 = vector.load %arg2[%c5, %c0_62] : memref<8x128xf32, #tpu.memory_space<vmem>>, vector<1x128xf32>
    %79 = vector.broadcast %78 : vector<1x128xf32> to vector<32x128xf32>
    %80 = arith.addf %77, %79 : vector<32x128xf32>
    %cst_63 = arith.constant dense<0xFF800000> : vector<32xf32>
    %81 = vector.multi_reduction <maximumf>, %80, %cst_63 [1] : vector<32x128xf32> to vector<32xf32>
    %82 = vector.shape_cast %81 : vector<32xf32> to vector<32x1xf32>
    %83 = vector.broadcast %82 : vector<32x1xf32> to vector<32x128xf32>
    %84 = arith.subf %80, %83 : vector<32x128xf32>
    %85 = math.exp %84 : vector<32x128xf32>
    %cst_64 = arith.constant dense<0.000000e+00> : vector<32xf32>
    %86 = vector.multi_reduction <add>, %85, %cst_64 [1] : vector<32x128xf32> to vector<32xf32>
    %87 = vector.shape_cast %86 : vector<32xf32> to vector<32x1xf32>
    %88 = tpu.reciprocal %87 {approx = true} : vector<32x1xf32> -> vector<32x1xf32>
    %89 = vector.broadcast %88 : vector<32x1xf32> to vector<32x128xf32>
    %90 = arith.mulf %85, %89 : vector<32x128xf32>
    %c0_65 = arith.constant 0 : index
    %c0_66 = arith.constant 0 : index
    %91 = vector.load %arg3[%c0_65, %c0_66] : memref<32x128xf32, #tpu.memory_space<vmem>>, vector<32x128xf32>
    tpu.vector_store %arg3[%c0_65, %c0_66], %90 {strides = array<i32>} : memref<32x128xf32, #tpu.memory_space<vmem>>, vector<32x128xf32>,
    return
  }
}

</mosaic_0001>

<bundles_post_ra>
// kernel: tpu_custom_call.1
= control target key start
LH: loop header
LB: loop body
LE: loop exit
PB: predicated region body
PF: predicated region fallthrough
CT: control target
= control target key end

     0   :  { %8 = vsyncpa [#allocation3], 0  ;;  %s1611_s0 = inlined_call_operand.hbm [shape: f32[32,32], index: 0, kind: input, shape index: {}]   ;;  %s1612_s1 = inlined_call_operand.hbm [shape: f32[480,128], index: 1, kind: input, shape index: {}]   ;;  %s1613_s2 = inlined_call_operand.hbm [shape: f32[8,128], index: 2, kind: input, shape index: {}]   ;;  %s1614_s3 = inlined_call_operand.hbm [shape: f32[32,128], index: 3, kind: output, shape index: {}]  }
   0x1   :  { %9 = vsyncpa [#allocation6], 0 }
   0x2   :  { %10 = vsyncpa [#allocation4], 0  ;;  %s28_s14 = sshll.u32 %s1612_s1, 4  ;;  %s1404_s15 = smov [#allocation5]   ;;  %s29_s14 = int_to_ptr.hbm [resolvable:$true] %s28_s14 }
   0x3   :  { %s30_s16 = sshll.u32 %s1404_s15, 4  ;;  %s15_s19 = sshll.u32 %s1611_s0, 4  ;;  %s31_s16 = int_to_ptr.vmem [resolvable:$true] %s30_s16  ;;  %s16_s19 = int_to_ptr.hbm [resolvable:$true] %s15_s19 }
   0x4   :  { %s1405_s20 = smov 128   ;;  %s1406_s21 = smov 8  }
   0x5   :  { %36 = dma.hbm_to_vmem [thread:$0]  %s29_s14, 7680, %s31_s16, [#allocation6], %s1405_s20, %s1405_s20, %s1406_s21  }
   0x6   :  { %s1407_s22 = smov [#allocation2]   ;;  %s42_s1 = sshll.u32 %s1613_s2, 4  ;;  %s43_s1 = int_to_ptr.hbm [resolvable:$true] %s42_s1 }
   0x7   :  { %s17_s23 = sshll.u32 %s1407_s22, 4  ;;  %s1408_s0 = smov [#allocation7]   ;;  %s18_s23 = int_to_ptr.vmem [resolvable:$true] %s17_s23 }
   0x8   :  { %23 = dma.hbm_to_vmem [thread:$0]  %s16_s19, 512, %s18_s23, [#allocation3], %s1405_s20, %s1405_s20, %s1406_s21  }
   0x9   :  { %s44_s26 = sshll.u32 %s1408_s0, 4  ;;  %s45_s26 = int_to_ptr.vmem [resolvable:$true] %s44_s26 }
   0xa   :  { %47 = dma.hbm_to_vmem [thread:$0]  %s43_s1, 128, %s45_s26, [#allocation6]  }
   0xb   :  { %1398 = dma.done.wait [#allocation3], 512  }
   0xc   :  { %1399 = vsyncadd [#allocation3], 4294966784 }
   0xd   :  { %1400 = dma.done.wait [#allocation6], 7808  }
   0xe   :  { %1401 = vsyncadd [#allocation6], 4294959488  ;;  %v67_v0 = vld [vmem:[#allocation5 + $0x18] sm:$0xff]  ;;  %v66_v1 = vld [vmem:[#allocation5 + $0x10] sm:$0xff]  ;;  %vm70_vm0 = vcmask 261120   ;;  %vm302_vm1 = vcmask 130048  }
   0xf   :  { %95 = vmatpush.msra.mxu0 %v67_v0  ;;  %v65_v2 = vld [vmem:[#allocation5 + $0x8] sm:$0xff]  ;;  %v115_v3 = vld [vmem:[#allocation5 + $0x38] sm:$0xff]  ;;  %v64_v4 = vld [vmem:[#allocation5] sm:$0xff]  ;;  %s1409_s2 = smov [#allocation8]   ;;  %s1164_s30 = sshll.u32 %s1614_s3, 4  ;;  %s1165_s30 = int_to_ptr.hbm [resolvable:$true] %s1164_s30 }
  0x10   :  { %142 = vmatpush.msra.mxu1 %v115_v3  ;;  %v114_v5 = vld [vmem:[#allocation5 + $0x30] sm:$0xff]  ;;  %v60_v6 = vld [vmem:[#allocation2] sm:$0xff]  ;;  %v61_v7 = vld [vmem:[#allocation2 + $0x8] sm:$0xff]  ;;  %s1162_s27 = sshll.u32 %s1409_s2, 4  ;;  %s1163_s27 = int_to_ptr.vmem [resolvable:$true] %s1162_s27 }
  0x11   :  { %96 = vmatpush.msra.mxu0 %v66_v1  ;;  %v62_v8 = vld [vmem:[#allocation2 + $0x10] sm:$0xff]  ;;  %v63_v9 = vld [vmem:[#allocation2 + $0x18] sm:$0xff]  ;;  %v113_v10 = vld [vmem:[#allocation5 + $0x28] sm:$0xff] }
  0x12   :  { %143 = vmatpush.msra.mxu1 %v114_v5  ;;  %v112_v11 = vld [vmem:[#allocation5 + $0x20] sm:$0xff]  ;;  %v166_v12 = vld [vmem:[#allocation5 + $0x98] sm:$0xff]  ;;  %v165_v22 = vld [vmem:[#allocation5 + $0x90] sm:$0xff] }
  0x13   :  { %97 = vmatpush.msra.mxu0 %v65_v2  ;;  %191 = vmatpush.msra.mxu2 %v166_v12  ;;  %v1280_v13 = vld [vmem:[#allocation7] ss:$0 sm:$0xff]  ;;  %v164_v23 = vld [vmem:[#allocation5 + $0x88] sm:$0xff]  ;;  %v1281_v25 = vld [vmem:[#allocation7 + $0x1] ss:$0 sm:$0xff] }
  0x14   :  { %144 = vmatpush.msra.mxu1 %v113_v10  ;;  %v163_v24 = vld [vmem:[#allocation5 + $0x80] sm:$0xff]  ;;  %v254_v38 = vld [vmem:[#allocation5 + $0xc8] sm:$0xff]  ;;  %v1473_v50 = vld [vmem:[#allocation5 + $0x170] sm:$0xff] }
  0x15   :  { %98 = vmatpush.msra.mxu0 %v64_v4  ;;  %192 = vmatpush.msra.mxu2 %v165_v22  ;;  %v253_v39 = vld [vmem:[#allocation5 + $0xc0] sm:$0xff]  ;;  %v386_v46 = vld [vmem:[#allocation5 + $0xe8] sm:$0xff]  ;;  %v1475_v51 = vld [vmem:[#allocation5 + $0x190] sm:$0xff] }
  0x16   :  { %1178 = vmatmul.msk.f32.vlgmr.msra.gmra.mxu0 %vm70_vm0, %v60_v6  ;;  %145 = vmatpush.msra.mxu1 %v112_v11  ;;  %v1457_v44 = vld [vmem:[#allocation5 + $0x160] sm:$0xff]  ;;  %v1465_v48 = vld [vmem:[#allocation5 + $0x168] sm:$0xff]  ;;  %v1481_v52 = vld [vmem:[#allocation5 + $0x178] sm:$0xff] }
  0x17   :  { %193 = vmatpush.msra.mxu2 %v164_v23  ;;  %v1459_v45 = vld [vmem:[#allocation5 + $0x180] sm:$0xff]  ;;  %v1467_v49 = vld [vmem:[#allocation5 + $0x188] sm:$0xff]  ;;  %v1483_v53 = vld [vmem:[#allocation5 + $0x198] sm:$0xff] }
  0x18   :  { %v385_v47 = vld [vmem:[#allocation5 + $0xe0] sm:$0xff]  ;;  %v301_v54 = vld [vmem:[#allocation5 + $0xd8] sm:$0xff]  ;;  %v1494_v56 = vld [vmem:[#allocation5 + $0x1a8] sm:$0xff] }
  0x19   :  { %194 = vmatpush.msra.mxu2 %v163_v24  ;;  %329 = vmatpush.msrb.mxu1 %v301_v54  ;;  %v1489_v55 = vld [vmem:[#allocation5 + $0x1a0] sm:$0xff]  ;;  %v1499_v57 = vld [vmem:[#allocation5 + $0x1b0] sm:$0xff]  ;;  %v1504_v58 = vld [vmem:[#allocation5 + $0x1b8] sm:$0xff] }
  0x1a   :  { %v300_v59 = vld [vmem:[#allocation5 + $0xd0] sm:$0xff]  ;;  %v478_v60 = vld [vmem:[#allocation5 + $0xf8] sm:$0xff] }
  0x1b   :  { %370 = vmatpush.msrb.mxu2 %v254_v38  ;;  %330 = vmatpush.msrb.mxu1 %v300_v59  ;;  %v477_v62 = vld [vmem:[#allocation5 + $0xf0] sm:$0xff] }
  0x1c   :  { %v1528_v11 = vld [vmem:[#allocation5 + $0x1d0] sm:$0xff] }
  0x1d   :  { %371 = vmatpush.msrb.mxu2 %v253_v39 }
  0x1e   :  { %1179 = vmatmul.msk.f32.gmra.mxu0 %vm70_vm0, %v61_v7  ;;  %v1518_v7 = vld [vmem:[#allocation5 + $0x1c0] sm:$0xff] }
  0x26   :  { %1180 = vmatmul.msk.f32.gmra.mxu0 %vm70_vm0, %v62_v8 }
  0x2e   :  { %1181 = vmatmul.msk.f32.gmra.mxu0 %vm70_vm0, %v63_v9  ;;  %v1523_v9 = vld [vmem:[#allocation5 + $0x1c8] sm:$0xff] }
  0x93   :  { %v100_v14 = vpop.f32.mrf.mxu0 }
  0x94   :  { %v101_v15 = vadd.f32 %v1280_v13, %v100_v14  ;;  %v570_v14 = vld [vmem:[#allocation5 + $0x108] sm:$0xff] }
  0x96   :  { %1182 = vmatmul.msk.f32.vlgmr.msra.gmra.mxu1 %vm70_vm0, %v101_v15 }
  0x97   :  { %505 = vmatpush.msra.mxu1 %v478_v60 }
  0x99   :  { %506 = vmatpush.msra.mxu1 %v477_v62 }
  0x9b   :  { %v103_v16 = vpop.f32.mrf.mxu0 }
  0x9c   :  { %v104_v17 = vadd.f32 %v1280_v13, %v103_v16  ;;  %v569_v16 = vld [vmem:[#allocation5 + $0x100] sm:$0xff] }
  0x9e   :  { %1183 = vmatmul.msk.f32.gmra.mxu1 %vm70_vm0, %v104_v17 }
  0xa3   :  { %v106_v18 = vpop.f32.mrf.mxu0 }
  0xa4   :  { %v107_v19 = vadd.f32 %v1280_v13, %v106_v18 }
  0xa6   :  { %1184 = vmatmul.msk.f32.gmra.mxu1 %vm70_vm0, %v107_v19 }
  0xab   :  { %v109_v20 = vpop.f32.mrf.mxu0 }
  0xac   :  { %v110_v21 = vadd.f32 %v1280_v13, %v109_v20  ;;  %v1533_v13 = vld [vmem:[#allocation5 + $0x1d8] sm:$0xff] }
  0xae   :  { %1185 = vmatmul.msk.f32.gmra.mxu1 %vm70_vm0, %v110_v21 }
 0x113   :  { %v147_v26 = vpop.f32.mrf.mxu1 }
 0x114   :  { %v148_v27 = vadd.f32 %v1281_v25, %v147_v26 }
 0x116   :  { %v159_v28 = vmax.f32 %v148_v27, 0.0  ;;  %v629_v27 = vld [vmem:[#allocation5 + $0xb8] sm:$0xff] }
 0x118   :  { %1186 = vmatmul.msk.f32.vlgmr.msra.gmra.mxu2 %vm70_vm0, %v159_v28 }
 0x11b   :  { %v150_v29 = vpop.f32.mrf.mxu1 }
 0x11c   :  { %v151_v30 = vadd.f32 %v1281_v25, %v150_v29  ;;  %v628_v29 = vld [vmem:[#allocation5 + $0xb0] sm:$0xff] }
 0x11e   :  { %v160_v31 = vmax.f32 %v151_v30, 0.0 }
 0x120   :  { %1187 = vmatmul.msk.f32.gmra.mxu2 %vm70_vm0, %v160_v31  ;;  %v627_v31 = vld [vmem:[#allocation5 + $0xa8] sm:$0xff] }
 0x123   :  { %v153_v32 = vpop.f32.mrf.mxu1 }
 0x124   :  { %v154_v33 = vadd.f32 %v1281_v25, %v153_v32  ;;  %v626_v32 = vld [vmem:[#allocation5 + $0xa0] sm:$0xff] }
 0x126   :  { %v161_v34 = vmax.f32 %v154_v33, 0.0 }
 0x128   :  { %1188 = vmatmul.msk.f32.gmra.mxu2 %vm70_vm0, %v161_v34 }
 0x12b   :  { %v156_v35 = vpop.f32.mrf.mxu1 }
 0x12c   :  { %v157_v36 = vadd.f32 %v1281_v25, %v156_v35 }
 0x12e   :  { %v162_v37 = vmax.f32 %v157_v36, 0.0 }
 0x130   :  { %1189 = vmatmul.msk.f32.gmra.mxu2 %vm70_vm0, %v162_v37 }
 0x19b   :  { %v196_v40 = vpop.f32.mrf.mxu2 }
 0x1a3   :  { %v199_v41 = vpop.f32.mrf.mxu2 }
 0x1ab   :  { %v202_v42 = vpop.f32.mrf.mxu2 }
 0x1b3   :  { %v205_v43 = vpop.f32.mrf.mxu2 }
 0x1b4   :  { %236 = vmatpush.msra.mxu3 %v205_v43  ;;  %283 = vmatpush.msrb.mxu0 %v205_v43 }
 0x1b5   :  { %552 = vmatpush.msra.mxu2 %v205_v43 }
 0x1b6   :  { %237 = vmatpush.msra.mxu3 %v202_v42  ;;  %284 = vmatpush.msrb.mxu0 %v202_v42 }
 0x1b7   :  { %553 = vmatpush.msra.mxu2 %v202_v42 }
 0x1b8   :  { %238 = vmatpush.msra.mxu3 %v199_v41  ;;  %285 = vmatpush.msrb.mxu0 %v199_v41 }
 0x1b9   :  { %554 = vmatpush.msra.mxu2 %v199_v41 }
 0x1ba   :  { %239 = vmatpush.msra.mxu3 %v196_v40  ;;  %286 = vmatpush.msrb.mxu0 %v196_v40 }
 0x1bb   :  { %555 = vmatpush.msra.mxu2 %v196_v40  ;;  %1190 = vmatmul.msk.f32.vlgmr.msra.gmra.mxu3 %vm70_vm0, %v1457_v44 }
 0x1bc   :  { %1194 = vmatmul.msk.f32.vlgmr.msrb.gmra.mxu0 %vm70_vm0, %v1459_v45  ;;  %413 = vmatpush.msrb.mxu3 %v386_v46 }
 0x1bd   :  { %460 = vmatpush.msra.mxu0 %v205_v43 }
 0x1be   :  { %414 = vmatpush.msrb.mxu3 %v385_v47 }
 0x1bf   :  { %461 = vmatpush.msra.mxu0 %v202_v42 }
 0x1c0   :  { %597 = vmatpush.msra.mxu3 %v570_v14 }
 0x1c1   :  { %462 = vmatpush.msra.mxu0 %v199_v41 }
 0x1c2   :  { %598 = vmatpush.msra.mxu3 %v569_v16 }
 0x1c3   :  { %463 = vmatpush.msra.mxu0 %v196_v40  ;;  %1191 = vmatmul.msk.f32.gmra.mxu3 %vm70_vm0, %v1465_v48 }
 0x1c4   :  { %1195 = vmatmul.msk.f32.gmra.mxu0 %vm70_vm0, %v1467_v49 }
 0x1c5   :  { %654 = vmatpush.msrb.mxu0 %v629_v27  ;;  %v816_v27 = vld [vmem:[#allocation5 + $0x138] sm:$0xff] }
 0x1c7   :  { %655 = vmatpush.msrb.mxu0 %v628_v29 }
 0x1c9   :  { %656 = vmatpush.msrb.mxu0 %v627_v31 }
 0x1cb   :  { %1192 = vmatmul.msk.f32.gmra.mxu3 %vm70_vm0, %v1473_v50  ;;  %657 = vmatpush.msrb.mxu0 %v626_v32 }
 0x1cc   :  { %1196 = vmatmul.msk.f32.gmra.mxu0 %vm70_vm0, %v1475_v51 }
 0x1d3   :  { %1193 = vmatmul.msk.f32.gmra.mxu3 %vm70_vm0, %v1481_v52 }
 0x1d4   :  { %1197 = vmatmul.msk.f32.gmra.mxu0 %vm70_vm0, %v1483_v53 }
 0x1db   :  { %1206 = vmatmul.msk.f32.vlgmr.msrb.gmra.mxu3 %vm302_vm1, %v196_v40  ;;  %v1282_v40 = vld [vmem:[#allocation7 + $0x2] ss:$0 sm:$0xff] }
 0x1dc   :  { %1210 = vmatmul.msk.f32.vlgmr.msra.gmra.mxu0 %vm70_vm0, %v1489_v55 }
 0x1e3   :  { %1207 = vmatmul.msk.f32.gmra.mxu3 %vm302_vm1, %v199_v41 }
 0x1e4   :  { %1211 = vmatmul.msk.f32.gmra.mxu0 %vm70_vm0, %v1494_v56 }
 0x1eb   :  { %1208 = vmatmul.msk.f32.gmra.mxu3 %vm302_vm1, %v202_v42 }
 0x1ec   :  { %1212 = vmatmul.msk.f32.gmra.mxu0 %vm70_vm0, %v1499_v57 }
 0x1f3   :  { %1209 = vmatmul.msk.f32.gmra.mxu3 %vm302_vm1, %v205_v43 }
 0x1f4   :  { %1213 = vmatmul.msk.f32.gmra.mxu0 %vm70_vm0, %v1504_v58 }
 0x239   :  { %v288_v61 = vpop.f32.mrf.mxu0 }
 0x23a   :  { %1198 = vmatmul.msk.f32.vlgmr.msrb.gmra.mxu1 %vm302_vm1, %v288_v61 }
 0x23e   :  { %v241_v63 = vpop.f32.mrf.mxu3 }
 0x23f   :  { %1202 = vmatmul.msk.f32.vlgmr.msrb.gmra.mxu2 %vm302_vm1, %v241_v63 }
 0x241   :  { %v291_v0 = vpop.f32.mrf.mxu0 }
 0x242   :  { %1199 = vmatmul.msk.f32.gmra.mxu1 %vm302_vm1, %v291_v0 }
 0x246   :  { %v244_v1 = vpop.f32.mrf.mxu3 }
 0x247   :  { %1203 = vmatmul.msk.f32.gmra.mxu2 %vm302_vm1, %v244_v1 }
 0x249   :  { %v294_v2 = vpop.f32.mrf.mxu0 }
 0x24a   :  { %1200 = vmatmul.msk.f32.gmra.mxu1 %vm302_vm1, %v294_v2 }
 0x24e   :  { %v247_v3 = vpop.f32.mrf.mxu3 }
 0x24f   :  { %1204 = vmatmul.msk.f32.gmra.mxu2 %vm302_vm1, %v247_v3 }
 0x251   :  { %v297_v4 = vpop.f32.mrf.mxu0 }
 0x252   :  { %1201 = vmatmul.msk.f32.gmra.mxu1 %vm302_vm1, %v297_v4 }
 0x256   :  { %v250_v5 = vpop.f32.mrf.mxu3 }
 0x257   :  { %1205 = vmatmul.msk.f32.gmra.mxu2 %vm302_vm1, %v250_v5 }
 0x259   :  { %v465_v6 = vpop.f32.mrf.mxu0 }
 0x25a   :  { %1214 = vmatmul.msk.f32.vlgmr.msra.gmra.mxu1 %vm302_vm1, %v465_v6 }
 0x25e   :  { %v416_v26 = vpop.f32.mrf.mxu3 }
 0x25f   :  { %1218 = vmatmul.msk.f32.vlgmr.msra.gmra.mxu2 %vm70_vm0, %v1518_v7 }
 0x261   :  { %v468_v8 = vpop.f32.mrf.mxu0 }
 0x262   :  { %1215 = vmatmul.msk.f32.gmra.mxu1 %vm302_vm1, %v468_v8 }
 0x266   :  { %v419_v30 = vpop.f32.mrf.mxu3 }
 0x267   :  { %1219 = vmatmul.msk.f32.gmra.mxu2 %vm70_vm0, %v1523_v9 }
 0x269   :  { %v471_v10 = vpop.f32.mrf.mxu0 }
 0x26a   :  { %1216 = vmatmul.msk.f32.gmra.mxu1 %vm302_vm1, %v471_v10 }
 0x26e   :  { %v422_v34 = vpop.f32.mrf.mxu3 }
 0x26f   :  { %1220 = vmatmul.msk.f32.gmra.mxu2 %vm70_vm0, %v1528_v11 }
 0x271   :  { %v474_v12 = vpop.f32.mrf.mxu0 }
 0x272   :  { %1217 = vmatmul.msk.f32.gmra.mxu1 %vm302_vm1, %v474_v12 }
 0x276   :  { %v425_v36 = vpop.f32.mrf.mxu3 }
 0x277   :  { %1221 = vmatmul.msk.f32.gmra.mxu2 %vm70_vm0, %v1533_v13 }
 0x2b7   :  { %v332_v24 = vpop.f32.mrf.mxu1 }
 0x2bf   :  { %v335_v25 = vpop.f32.mrf.mxu1 }
 0x2c2   :  { %v373_v15 = vpop.f32.mrf.mxu2 }
 0x2c3   :  { %v374_v37 = vadd.f32 %v373_v15, %v332_v24 }
 0x2c5   :  { %v428_v38 = vadd.f32 %v416_v26, %v374_v37 }
 0x2c7   :  { %v338_v28 = vpop.f32.mrf.mxu1 }
 0x2ca   :  { %v376_v17 = vpop.f32.mrf.mxu2 }
 0x2cb   :  { %v377_v43 = vadd.f32 %v376_v17, %v335_v25 }
 0x2cd   :  { %v429_v54 = vadd.f32 %v419_v30, %v377_v43 }
 0x2cf   :  { %v341_v33 = vpop.f32.mrf.mxu1 }
 0x2d2   :  { %v379_v18 = vpop.f32.mrf.mxu2 }
 0x2d3   :  { %v380_v62 = vadd.f32 %v379_v18, %v338_v28  ;;  %v815_v28 = vld [vmem:[#allocation5 + $0x130] sm:$0xff] }
 0x2d5   :  { %v430_v2 = vadd.f32 %v422_v34, %v380_v62  ;;  %v967_v34 = vld [vmem:[#allocation5 + $0x150] sm:$0xff] }
 0x2d7   :  { %v508_v35 = vpop.f32.mrf.mxu1 }
 0x2d8   :  { %v520_v39 = vadd.f32 %v508_v35, %v428_v38 }
 0x2da   :  { %v382_v19 = vpop.f32.mrf.mxu2 }
 0x2db   :  { %v383_v6 = vadd.f32 %v382_v19, %v341_v33 }
 0x2dd   :  { %v431_v14 = vadd.f32 %v425_v36, %v383_v6 }
 0x2df   :  { %v511_v41 = vpop.f32.mrf.mxu1 }
 0x2e0   :  { %v521_v60 = vadd.f32 %v511_v41, %v429_v54  ;;  %v1025_v54 = vld [vmem:[#allocation5 + $0x48] sm:$0xff] }
 0x2e2   :  { %v557_v20 = vpop.f32.mrf.mxu2 }
 0x2e3   :  { %1222 = vmatmul.msk.f32.vlgmr.msra.gmra.mxu3 %vm302_vm1, %v557_v20 }
 0x2e7   :  { %v514_v0 = vpop.f32.mrf.mxu1 }
 0x2e8   :  { %v522_v4 = vadd.f32 %v514_v0, %v430_v2 }
 0x2ea   :  { %v560_v21 = vpop.f32.mrf.mxu2 }
 0x2eb   :  { %1223 = vmatmul.msk.f32.gmra.mxu3 %vm302_vm1, %v560_v21 }
 0x2ef   :  { %v517_v12 = vpop.f32.mrf.mxu1 }
 0x2f0   :  { %v523_v16 = vadd.f32 %v517_v12, %v431_v14 }
 0x2f2   :  { %v563_v22 = vpop.f32.mrf.mxu2 }
 0x2f3   :  { %1224 = vmatmul.msk.f32.gmra.mxu3 %vm302_vm1, %v563_v22  ;;  %v701_v22 = vld [vmem:[#allocation5 + $0x118] sm:$0xff] }
 0x2f4   :  { %800 = vmatpush.msra.mxu0 %v701_v22 }
 0x2fa   :  { %v566_v23 = vpop.f32.mrf.mxu2 }
 0x2fb   :  { %1225 = vmatmul.msk.f32.gmra.mxu3 %vm302_vm1, %v566_v23  ;;  %v700_v23 = vld [vmem:[#allocation5 + $0x110] sm:$0xff] }
 0x2fc   :  { %801 = vmatpush.msra.mxu0 %v700_v23 }
 0x366   :  { %v600_v42 = vpop.f32.mrf.mxu3 }
 0x367   :  { %v612_v46 = vadd.f32 %v600_v42, %v520_v39  ;;  %v1027_v42 = vld [vmem:[#allocation5 + $0x58] sm:$0xff] }
 0x369   :  { %v618_v47 = vadd.f32 %v1282_v40, %v612_v46  ;;  %v1026_v46 = vld [vmem:[#allocation5 + $0x50] sm:$0xff] }
 0x36b   :  { %v622_v59 = vmax.f32 %v618_v47, 0.0 }
 0x36d   :  { %1226 = vmatmul.msk.f32.vlgmr.msrb.gmra.mxu0 %vm70_vm0, %v622_v59  ;;  %v1024_v59 = vld [vmem:[#allocation5 + $0x40] sm:$0xff] }
 0x36e   :  { %v603_v61 = vpop.f32.mrf.mxu3 }
 0x36f   :  { %v613_v63 = vadd.f32 %v603_v61, %v521_v60 }
 0x371   :  { %v619_v1 = vadd.f32 %v1282_v40, %v613_v63 }
 0x373   :  { %v623_v3 = vmax.f32 %v619_v1, 0.0 }
 0x375   :  { %1227 = vmatmul.msk.f32.gmra.mxu0 %vm70_vm0, %v623_v3  ;;  %v1283_v3 = vld [vmem:[#allocation7 + $0x3] ss:$0 sm:$0xff] }
 0x376   :  { %v606_v5 = vpop.f32.mrf.mxu3 }
 0x377   :  { %v614_v8 = vadd.f32 %v606_v5, %v522_v4  ;;  %v1074_v4 = vld [vmem:[#allocation5 + $0x78] sm:$0xff]  ;;  %v1073_v5 = vld [vmem:[#allocation5 + $0x70] sm:$0xff] }
 0x379   :  { %v620_v10 = vadd.f32 %v1282_v40, %v614_v8 }
 0x37b   :  { %v624_v15 = vmax.f32 %v620_v10, 0.0 }
 0x37d   :  { %1228 = vmatmul.msk.f32.gmra.mxu0 %vm70_vm0, %v624_v15 }
 0x37e   :  { %v609_v17 = vpop.f32.mrf.mxu3 }
 0x37f   :  { %v615_v18 = vadd.f32 %v609_v17, %v523_v16 }
 0x381   :  { %v621_v20 = vadd.f32 %v1282_v40, %v615_v18 }
 0x383   :  { %v625_v21 = vmax.f32 %v621_v20, 0.0 }
 0x385   :  { %1229 = vmatmul.msk.f32.gmra.mxu0 %vm70_vm0, %v625_v21 }
 0x3ea   :  { %v659_v24 = vpop.f32.mrf.mxu0 }
 0x3f2   :  { %v662_v19 = vpop.f32.mrf.mxu0 }
 0x3fa   :  { %v665_v25 = vpop.f32.mrf.mxu0 }
 0x402   :  { %v668_v26 = vpop.f32.mrf.mxu0 }
 0x403   :  { %683 = vmatpush.msrb.mxu1 %v668_v26  ;;  %714 = vmatpush.msrb.mxu2 %v668_v26 }
 0x404   :  { %950 = vmatpush.msrb.mxu0 %v668_v26 }
 0x405   :  { %684 = vmatpush.msrb.mxu1 %v665_v25  ;;  %715 = vmatpush.msrb.mxu2 %v665_v25 }
 0x406   :  { %951 = vmatpush.msrb.mxu0 %v665_v25 }
 0x407   :  { %685 = vmatpush.msrb.mxu1 %v662_v19  ;;  %716 = vmatpush.msrb.mxu2 %v662_v19 }
 0x408   :  { %952 = vmatpush.msrb.mxu0 %v662_v19 }
 0x409   :  { %686 = vmatpush.msrb.mxu1 %v659_v24  ;;  %717 = vmatpush.msrb.mxu2 %v659_v24 }
 0x40a   :  { %953 = vmatpush.msrb.mxu0 %v659_v24  ;;  %1230 = vmatmul.msk.f32.vlgmr.msrb.gmra.mxu1 %vm70_vm0, %v1457_v44  ;;  %v732_v44 = vld [vmem:[#allocation5 + $0x128] sm:$0xff] }
 0x40b   :  { %1234 = vmatmul.msk.f32.vlgmr.msrb.gmra.mxu2 %vm70_vm0, %v1459_v45  ;;  %843 = vmatpush.msra.mxu1 %v816_v27  ;;  %v731_v45 = vld [vmem:[#allocation5 + $0x120] sm:$0xff] }
 0x40c   :  { %874 = vmatpush.msra.mxu2 %v668_v26  ;;  %759 = vmatpush.msrb.mxu3 %v732_v44 }
 0x40d   :  { %844 = vmatpush.msra.mxu1 %v815_v28 }
 0x40e   :  { %875 = vmatpush.msra.mxu2 %v665_v25  ;;  %760 = vmatpush.msrb.mxu3 %v731_v45 }
 0x410   :  { %876 = vmatpush.msra.mxu2 %v662_v19 }
 0x412   :  { %877 = vmatpush.msra.mxu2 %v659_v24  ;;  %1231 = vmatmul.msk.f32.gmra.mxu1 %vm70_vm0, %v1465_v48 }
 0x413   :  { %1235 = vmatmul.msk.f32.gmra.mxu2 %vm70_vm0, %v1467_v49  ;;  %v892_v49 = vld [vmem:[#allocation5 + $0x148] sm:$0xff] }
 0x414   :  { %919 = vmatpush.msra.mxu3 %v892_v49  ;;  %1054 = vmatpush.msrb.mxu2 %v1027_v42 }
 0x416   :  { %1055 = vmatpush.msrb.mxu2 %v1026_v46 }
 0x418   :  { %1056 = vmatpush.msrb.mxu2 %v1025_v54 }
 0x41a   :  { %1232 = vmatmul.msk.f32.gmra.mxu1 %vm70_vm0, %v1473_v50  ;;  %1057 = vmatpush.msrb.mxu2 %v1024_v59 }
 0x41b   :  { %1236 = vmatmul.msk.f32.gmra.mxu2 %vm70_vm0, %v1475_v51  ;;  %v891_v51 = vld [vmem:[#allocation5 + $0x140] sm:$0xff] }
 0x41c   :  { %920 = vmatpush.msra.mxu3 %v891_v51 }
 0x422   :  { %1233 = vmatmul.msk.f32.gmra.mxu1 %vm70_vm0, %v1481_v52 }
 0x423   :  { %1237 = vmatmul.msk.f32.gmra.mxu2 %vm70_vm0, %v1483_v53 }
 0x42a   :  { %1246 = vmatmul.msk.f32.vlgmr.msra.gmra.mxu1 %vm302_vm1, %v659_v24 }
 0x42b   :  { %1250 = vmatmul.msk.f32.vlgmr.msra.gmra.mxu2 %vm70_vm0, %v1489_v55 }
 0x432   :  { %1247 = vmatmul.msk.f32.gmra.mxu1 %vm302_vm1, %v662_v19 }
 0x433   :  { %1251 = vmatmul.msk.f32.gmra.mxu2 %vm70_vm0, %v1494_v56 }
 0x43a   :  { %1248 = vmatmul.msk.f32.gmra.mxu1 %vm302_vm1, %v665_v25 }
 0x43b   :  { %1252 = vmatmul.msk.f32.gmra.mxu2 %vm70_vm0, %v1499_v57 }
 0x442   :  { %1249 = vmatmul.msk.f32.gmra.mxu1 %vm302_vm1, %v668_v26 }
 0x443   :  { %1253 = vmatmul.msk.f32.gmra.mxu2 %vm70_vm0, %v1504_v58 }
 0x487   :  { %v688_v48 = vpop.f32.mrf.mxu1 }
 0x488   :  { %1242 = vmatmul.msk.f32.vlgmr.msra.gmra.mxu0 %vm302_vm1, %v688_v48 }
 0x48e   :  { %v719_v50 = vpop.f32.mrf.mxu2 }
 0x48f   :  { %1238 = vmatmul.msk.f32.vlgmr.msrb.gmra.mxu3 %vm302_vm1, %v719_v50  ;;  %v691_v52 = vpop.f32.mrf.mxu1 }
 0x490   :  { %1243 = vmatmul.msk.f32.gmra.mxu0 %vm302_vm1, %v691_v52  ;;  %1101 = vmatpush.msrb.mxu3 %v1074_v4 }
 0x492   :  { %1102 = vmatpush.msrb.mxu3 %v1073_v5 }
 0x496   :  { %v722_v53 = vpop.f32.mrf.mxu2 }
 0x497   :  { %1239 = vmatmul.msk.f32.gmra.mxu3 %vm302_vm1, %v722_v53  ;;  %v694_v55 = vpop.f32.mrf.mxu1 }
 0x498   :  { %1244 = vmatmul.msk.f32.gmra.mxu0 %vm302_vm1, %v694_v55 }
 0x49e   :  { %v725_v56 = vpop.f32.mrf.mxu2 }
 0x49f   :  { %1240 = vmatmul.msk.f32.gmra.mxu3 %vm302_vm1, %v725_v56  ;;  %v697_v57 = vpop.f32.mrf.mxu1  ;;  %v1072_v56 = vld [vmem:[#allocation5 + $0x68] sm:$0xff] }
 0x4a0   :  { %1245 = vmatmul.msk.f32.gmra.mxu0 %vm302_vm1, %v697_v57  ;;  %v1071_v57 = vld [vmem:[#allocation5 + $0x60] sm:$0xff]  ;;  %1103 = vmatpush.msrb.mxu3 %v1072_v56 }
 0x4a2   :  { %1104 = vmatpush.msrb.mxu3 %v1071_v57 }
 0x4a6   :  { %v728_v58 = vpop.f32.mrf.mxu2 }
 0x4a7   :  { %1241 = vmatmul.msk.f32.gmra.mxu3 %vm302_vm1, %v728_v58  ;;  %v846_v41 = vpop.f32.mrf.mxu1  ;;  %v1284_v58 = vld [vmem:[#allocation7 + $0x4] ss:$0 sm:$0xff] }
 0x4a8   :  { %1258 = vmatmul.msk.f32.vlgmr.msrb.gmra.mxu0 %vm70_vm0, %v1518_v7  ;;  %v968_v7 = vld [vmem:[#allocation5 + $0x158] sm:$0xff] }
 0x4a9   :  { %995 = vmatpush.msrb.mxu1 %v968_v7 }
 0x4ab   :  { %996 = vmatpush.msrb.mxu1 %v967_v34 }
 0x4ae   :  { %v879_v29 = vpop.f32.mrf.mxu2 }
 0x4af   :  { %1254 = vmatmul.msk.f32.vlgmr.msra.gmra.mxu3 %vm302_vm1, %v879_v29  ;;  %v849_v47 = vpop.f32.mrf.mxu1 }
 0x4b0   :  { %1259 = vmatmul.msk.f32.gmra.mxu0 %vm70_vm0, %v1523_v9 }
 0x4b6   :  { %v882_v30 = vpop.f32.mrf.mxu2 }
 0x4b7   :  { %1255 = vmatmul.msk.f32.gmra.mxu3 %vm302_vm1, %v882_v30  ;;  %v852_v61 = vpop.f32.mrf.mxu1 }
 0x4b8   :  { %1260 = vmatmul.msk.f32.gmra.mxu0 %vm70_vm0, %v1528_v11 }
 0x4be   :  { %v885_v31 = vpop.f32.mrf.mxu2 }
 0x4bf   :  { %1256 = vmatmul.msk.f32.gmra.mxu3 %vm302_vm1, %v885_v31  ;;  %v855_v63 = vpop.f32.mrf.mxu1 }
 0x4c0   :  { %1261 = vmatmul.msk.f32.gmra.mxu0 %vm70_vm0, %v1533_v13 }
 0x4c6   :  { %v888_v32 = vpop.f32.mrf.mxu2 }
 0x4c7   :  { %1257 = vmatmul.msk.f32.gmra.mxu3 %vm302_vm1, %v888_v32 }
 0x505   :  { %v803_v33 = vpop.f32.mrf.mxu0 }
 0x50d   :  { %v806_v9 = vpop.f32.mrf.mxu0 }
 0x512   :  { %v762_v39 = vpop.f32.mrf.mxu3 }
 0x513   :  { %v804_v0 = vadd.f32 %v803_v33, %v762_v39 }
 0x515   :  { %v809_v35 = vpop.f32.mrf.mxu0  ;;  %v858_v1 = vadd.f32 %v846_v41, %v804_v0 }
 0x51a   :  { %v765_v40 = vpop.f32.mrf.mxu3 }
 0x51b   :  { %v807_v10 = vadd.f32 %v806_v9, %v765_v40 }
 0x51d   :  { %v812_v36 = vpop.f32.mrf.mxu0  ;;  %v859_v15 = vadd.f32 %v849_v47, %v807_v10 }
 0x522   :  { %v768_v43 = vpop.f32.mrf.mxu3 }
 0x523   :  { %v810_v20 = vadd.f32 %v809_v35, %v768_v43  ;;  %v1285_v35 = vld [vmem:[#allocation7 + $0x5] ss:$0 sm:$0xff] }
 0x525   :  { %v955_v37 = vpop.f32.mrf.mxu0  ;;  %v860_v24 = vadd.f32 %v852_v61, %v810_v20 }
 0x526   :  { %1262 = vmatmul.msk.f32.vlgmr.msrb.gmra.mxu1 %vm302_vm1, %v955_v37 }
 0x52a   :  { %v771_v60 = vpop.f32.mrf.mxu3 }
 0x52b   :  { %v813_v27 = vadd.f32 %v812_v36, %v771_v60 }
 0x52d   :  { %v958_v11 = vpop.f32.mrf.mxu0  ;;  %v861_v48 = vadd.f32 %v855_v63, %v813_v27 }
 0x52e   :  { %1263 = vmatmul.msk.f32.gmra.mxu1 %vm302_vm1, %v958_v11 }
 0x532   :  { %v922_v62 = vpop.f32.mrf.mxu3 }
 0x533   :  { %v934_v2 = vadd.f32 %v922_v62, %v858_v1 }
 0x535   :  { %v961_v38 = vpop.f32.mrf.mxu0 }
 0x536   :  { %1264 = vmatmul.msk.f32.gmra.mxu1 %vm302_vm1, %v961_v38 }
 0x53a   :  { %v925_v6 = vpop.f32.mrf.mxu3 }
 0x53b   :  { %v935_v17 = vadd.f32 %v925_v6, %v859_v15 }
 0x53d   :  { %v964_v13 = vpop.f32.mrf.mxu0 }
 0x53e   :  { %1265 = vmatmul.msk.f32.gmra.mxu1 %vm302_vm1, %v964_v13 }
 0x542   :  { %v928_v22 = vpop.f32.mrf.mxu3 }
 0x543   :  { %v936_v25 = vadd.f32 %v928_v22, %v860_v24 }
 0x54a   :  { %v931_v45 = vpop.f32.mrf.mxu3 }
 0x54b   :  { %v937_v50 = vadd.f32 %v931_v45, %v861_v48 }
 0x5a3   :  { %v998_v8 = vpop.f32.mrf.mxu1 }
 0x5a4   :  { %v1010_v12 = vadd.f32 %v998_v8, %v934_v2 }
 0x5a6   :  { %v1016_v14 = vadd.f32 %v1283_v3, %v1010_v12 }
 0x5a8   :  { %v1020_v16 = vmax.f32 %v1016_v14, 0.0 }
 0x5aa   :  { %1266 = vmatmul.msk.f32.vlgmr.msrb.gmra.mxu2 %vm70_vm0, %v1020_v16 }
 0x5ab   :  { %v1001_v18 = vpop.f32.mrf.mxu1 }
 0x5ac   :  { %v1011_v21 = vadd.f32 %v1001_v18, %v935_v17 }
 0x5ae   :  { %v1017_v23 = vadd.f32 %v1283_v3, %v1011_v21 }
 0x5b0   :  { %v1021_v19 = vmax.f32 %v1017_v23, 0.0 }
 0x5b2   :  { %1267 = vmatmul.msk.f32.gmra.mxu2 %vm70_vm0, %v1021_v19 }
 0x5b3   :  { %v1004_v26 = vpop.f32.mrf.mxu1 }
 0x5b4   :  { %v1012_v28 = vadd.f32 %v1004_v26, %v936_v25 }
 0x5b6   :  { %v1018_v44 = vadd.f32 %v1283_v3, %v1012_v28 }
 0x5b8   :  { %v1022_v49 = vmax.f32 %v1018_v44, 0.0 }
 0x5ba   :  { %1268 = vmatmul.msk.f32.gmra.mxu2 %vm70_vm0, %v1022_v49 }
 0x5bb   :  { %v1007_v51 = vpop.f32.mrf.mxu1 }
 0x5bc   :  { %v1013_v52 = vadd.f32 %v1007_v51, %v937_v50 }
 0x5be   :  { %v1019_v53 = vadd.f32 %v1283_v3, %v1013_v52 }
 0x5c0   :  { %v1023_v55 = vmax.f32 %v1019_v53, 0.0 }
 0x5c2   :  { %1269 = vmatmul.msk.f32.gmra.mxu2 %vm70_vm0, %v1023_v55 }
 0x62d   :  { %v1059_v29 = vpop.f32.mrf.mxu2 }
 0x62e   :  { %v1060_v30 = vadd.f32 %v1284_v58, %v1059_v29 }
 0x630   :  { %1270 = vmatmul.msk.f32.vlgmr.msrb.gmra.mxu3 %vm70_vm0, %v1060_v30 }
 0x635   :  { %v1062_v31 = vpop.f32.mrf.mxu2 }
 0x636   :  { %v1063_v32 = vadd.f32 %v1284_v58, %v1062_v31 }
 0x638   :  { %1271 = vmatmul.msk.f32.gmra.mxu3 %vm70_vm0, %v1063_v32 }
 0x63d   :  { %v1065_v7 = vpop.f32.mrf.mxu2 }
 0x63e   :  { %v1066_v33 = vadd.f32 %v1284_v58, %v1065_v7 }
 0x640   :  { %1272 = vmatmul.msk.f32.gmra.mxu3 %vm70_vm0, %v1066_v33 }
 0x645   :  { %v1068_v34 = vpop.f32.mrf.mxu2 }
 0x646   :  { %v1069_v9 = vadd.f32 %v1284_v58, %v1068_v34 }
 0x648   :  { %1273 = vmatmul.msk.f32.gmra.mxu3 %vm70_vm0, %v1069_v9 }
 0x6b3   :  { %v1106_v36 = vpop.f32.mrf.mxu3 }
 0x6b4   :  { %v1107_v37 = vadd.f32 %v1285_v35, %v1106_v36 }
 0x6b6   :  { %1118 = vmax.xlane.f32.xlu0 %v1107_v37 }
 0x6bb   :  { %v1109_v11 = vpop.f32.mrf.mxu3 }
 0x6bc   :  { %v1110_v38 = vadd.f32 %v1285_v35, %v1109_v11 }
 0x6be   :  { %1120 = vmax.xlane.f32.xlu0 %v1110_v38 }
 0x6c3   :  { %v1112_v13 = vpop.f32.mrf.mxu3 }
 0x6c4   :  { %v1113_v39 = vadd.f32 %v1285_v35, %v1112_v13 }
 0x6c6   :  { %1122 = vmax.xlane.f32.xlu1 %v1113_v39 }
 0x6cb   :  { %v1115_v40 = vpop.f32.mrf.mxu3 }
 0x6cc   :  { %v1116_v41 = vadd.f32 %v1285_v35, %v1115_v40 }
 0x6ce   :  { %1124 = vmax.xlane.f32.xlu1 %v1116_v41 }
 0x729   :  { %v1119_v42 = vpop.xlane.xlu0 %1118 }
 0x72a   :  { %v1126_v43 = vsub.f32 %v1107_v37, %v1119_v42 }
 0x72c   :  { %v1130_v46 = vmul.f32 1.442695, %v1126_v43 }
 0x72e   :  { %1286 = vpow2.f32 %v1130_v46 }
 0x731   :  { %v1121_v47 = vpop.xlane.xlu0 %1120 }
 0x732   :  { %v1127_v54 = vsub.f32 %v1110_v38, %v1121_v47 }
 0x734   :  { %v1287_v59 = vpop.eup %1286  ;;  %v1132_v60 = vmul.f32 1.442695, %v1127_v54 }
 0x735   :  { %1138 = vadd.xlane.f32.xlu2 %v1287_v59 }
 0x736   :  { %1288 = vpow2.f32 %v1132_v60 }
 0x739   :  { %v1123_v61 = vpop.xlane.xlu1 %1122 }
 0x73a   :  { %v1128_v62 = vsub.f32 %v1113_v39, %v1123_v61 }
 0x73c   :  { %v1289_v63 = vpop.eup %1288  ;;  %v1134_v0 = vmul.f32 1.442695, %v1128_v62 }
 0x73d   :  { %1140 = vadd.xlane.f32.xlu2 %v1289_v63 }
 0x73e   :  { %1290 = vpow2.f32 %v1134_v0 }
 0x741   :  { %v1125_v1 = vpop.xlane.xlu1 %1124 }
 0x742   :  { %v1129_v2 = vsub.f32 %v1116_v41, %v1125_v1 }
 0x744   :  { %v1291_v3 = vpop.eup %1290  ;;  %v1136_v4 = vmul.f32 1.442695, %v1129_v2 }
 0x745   :  { %1142 = vadd.xlane.f32.xlu0 %v1291_v3 }
 0x746   :  { %1292 = vpow2.f32 %v1136_v4 }
 0x74c   :  { %v1293_v5 = vpop.eup %1292 }
 0x74d   :  { %1144 = vadd.xlane.f32.xlu1 %v1293_v5 }
 0x7a8   :  { %v1139_v6 = vpop.xlane.xlu2 %1138 }
 0x7a9   :  { %1294 = vrcp.f32 %v1139_v6 }
 0x7af   :  { %v1295_v8 = vpop.eup %1294 }
 0x7b0   :  { %v1150_v10 = vmul.f32 %v1295_v8, %v1287_v59  ;;  %v1141_v12 = vpop.xlane.xlu2 %1140 }
 0x7b1   :  { %1296 = vrcp.f32 %v1141_v12 }
 0x7b2   :  { %1154 = vst [vmem:[#allocation8] sm:$0xff] %v1150_v10 }
 0x7b7   :  { %v1297_v14 = vpop.eup %1296 }
 0x7b8   :  { %v1151_v15 = vmul.f32 %v1297_v14, %v1289_v63  ;;  %v1143_v16 = vpop.xlane.xlu0 %1142 }
 0x7b9   :  { %1298 = vrcp.f32 %v1143_v16 }
 0x7ba   :  { %1155 = vst [vmem:[#allocation8 + $0x8] sm:$0xff] %v1151_v15 }
 0x7bf   :  { %v1299_v17 = vpop.eup %1298 }
 0x7c0   :  { %v1152_v18 = vmul.f32 %v1299_v17, %v1291_v3  ;;  %v1145_v20 = vpop.xlane.xlu1 %1144 }
 0x7c1   :  { %1300 = vrcp.f32 %v1145_v20 }
 0x7c2   :  { %1156 = vst [vmem:[#allocation8 + $0x10] sm:$0xff] %v1152_v18 }
 0x7c7   :  { %v1301_v21 = vpop.eup %1300 }
 0x7c8   :  { %v1153_v22 = vmul.f32 %v1301_v21, %v1293_v5 }
 0x7ca   :  { %1157 = vst [vmem:[#allocation8 + $0x18] sm:$0xff] %v1153_v22 }
 0x7cb   :  { %1170 = dma.vmem_to_hbm [thread:$0]  %s1163_s27, 512, %s1165_s30, [#allocation4], %s1405_s20, %s1405_s20, %s1406_s21  }
 0x7cc   :  { %1402 = dma.done.wait [#allocation4], 512  }
 0x7cd   :  { %1403 = vsyncadd [#allocation4], 4294966784 }
 0x7ce   :  { %1175 = vsyncpa [#allocation3], 1 }
 0x7cf   :  { %1176 = vsyncpa [#allocation6], 1 }
 0x7d0   :  { %1177 = vsyncpa [#allocation4], 1 }

</bundles_post_ra>
